<compile_context>
chip_gen: v6e
topology: v6e:2x2x1
jax: 0.10.0
libtpu: 0.0.40
codegen_flags: <defaults>
</compile_context>

<pallas_src>
import jax
import jax.numpy as jnp
from jax.experimental import pallas as pl
from jax.experimental.pallas import tpu as pltpu


def _masked_ce_partial_kernel(logits_ref, labels_ref, part_ref):
    """One (TILE_N, C) logits tile + (TILE_N, 1) label tile -> (1, 8, 128) partials."""
    logits = logits_ref[...].astype(jnp.float32)        # (TILE_N, C)
    labels = labels_ref[...]                             # (TILE_N, 1) int32

    # Target logit via compare+select (no explicit one-hot temporary).
    col = jax.lax.broadcasted_iota(jnp.int32, logits.shape, 1)           # (TILE_N, C)
    tgt = jnp.sum(jnp.where(col == labels, logits, 0.0),
                  axis=-1, keepdims=True)                                # (TILE_N, 1)

    # Numerically-stable log-sum-exp per row.
    row_max = jnp.max(logits, axis=-1, keepdims=True)                    # (TILE_N, 1)
    lse = row_max + jnp.log(jnp.sum(jnp.exp(logits - row_max),
                                    axis=-1, keepdims=True))             # (TILE_N, 1)

    ce = lse - tgt                                                       # (TILE_N, 1)
    mask = (labels > 0).astype(jnp.float32)                              # (TILE_N, 1)

    loss_part = jnp.sum(ce * mask)                                       # scalar f32
    mask_part = jnp.sum(mask)                                            # scalar f32

    # Pack the two partials into a lane-aligned (1, 8, 128) output tile:
    # [0,0,0] = masked loss sum, [0,0,1] = mask count, rest zeros.
    sub = jax.lax.broadcasted_iota(jnp.int32, part_ref.shape, 1)
    lane = jax.lax.broadcasted_iota(jnp.int32, part_ref.shape, 2)
    part_ref[...] = jnp.where((sub == 0) & (lane == 0), loss_part,
                              jnp.where((sub == 0) & (lane == 1), mask_part, 0.0))


def _choose_tile_n(n, c, itemsize):
    """Largest row-tile with a <= ~2 MiB logits slab (incl. f32 temp headroom)."""
    target_bytes = 2 * 1024 * 1024
    tile = target_bytes // max(1, c * itemsize)
    tile = max(8, min(int(tile), 2048))
    tile = (tile // 8) * 8                       # sublane alignment
    n_pad8 = ((n + 7) // 8) * 8
    return max(8, min(tile, n_pad8))


def custom_non_padding_token_loss(y_pred, y_true, num_class):
    """y_pred: (B, S, num_class) float, y_true: (B, S) int. Returns scalar f32."""
    assert y_pred.shape[-1] == num_class
    # Keep the caller's logits dtype (bf16 stays bf16); the kernel casts per
    # tile, so no full-size f32 copy of the logits is materialized in HBM.
    logits2d = y_pred.reshape(-1, num_class)
    labels2d = y_true.reshape(-1, 1).astype(jnp.int32)

    n, c = logits2d.shape
    itemsize = jnp.dtype(logits2d.dtype).itemsize
    tile_n = _choose_tile_n(n, c, itemsize)

    # Pad rows to a multiple of tile_n; padded rows get label 0, so they are
    # masked out of both the loss sum and the mask sum.
    n_pad = ((n + tile_n - 1) // tile_n) * tile_n
    if n_pad != n:
        logits2d = jnp.pad(logits2d, ((0, n_pad - n), (0, 0)))
        labels2d = jnp.pad(labels2d, ((0, n_pad - n), (0, 0)))

    g = n_pad // tile_n

    partials = pl.pallas_call(
        _masked_ce_partial_kernel,
        out_shape=jax.ShapeDtypeStruct((g, 8, 128), jnp.float32),
        grid_spec=pltpu.PrefetchScalarGridSpec(
            num_scalar_prefetch=0,
            grid=(g,),
            in_specs=[
                pl.BlockSpec((tile_n, c), lambda i: (i, 0)),
                pl.BlockSpec((tile_n, 1), lambda i: (i, 0)),
            ],
            out_specs=pl.BlockSpec((1, 8, 128), lambda i: (i, 0, 0)),
        ),
        compiler_params=pltpu.CompilerParams(
            # Each grid step writes a distinct output block -> fully parallel
            # (megacore-shardable on v7x; no-op on single-TC v5e/v6e).
            dimension_semantics=("parallel",),
            vmem_limit_bytes=32 * 1024 * 1024,
        ),
        cost_estimate=pl.CostEstimate(
            flops=int(6 * n_pad * c),
            transcendentals=int(n_pad * c),
            bytes_accessed=int(n_pad * c * itemsize + n_pad * 4 + g * 8 * 128 * 4),
        ),
    )(logits2d, labels2d)

    loss_sum = jnp.sum(partials[:, 0, 0])
    mask_sum = jnp.sum(partials[:, 0, 1])
    # NOTE: matches the PyTorch module exactly — no guard for mask_sum == 0
    # (an all-padding batch yields NaN/Inf in both implementations).
    return loss_sum / mask_sum


def _reference_loss(y_pred, y_true, num_class):
    logits = y_pred.reshape(-1, num_class).astype(jnp.float32)
    labels = y_true.reshape(-1)
    logp = jax.nn.log_softmax(logits, axis=-1)
    ce = -jnp.take_along_axis(logp, labels[:, None], axis=-1)[:, 0]
    mask = (labels > 0).astype(jnp.float32)
    return jnp.sum(ce * mask) / jnp.sum(mask)


if __name__ == "__main__":
    key = jax.random.PRNGKey(0)

    # Case 1: standard small shape (B=2, S=8, C=32).
    B, S, NUM_CLASS = 2, 8, 32
    k_pred, k_true, key = jax.random.split(key, 3)
    y_pred = jax.random.normal(k_pred, (B, S, NUM_CLASS), dtype=jnp.float32)
    y_true = jax.random.randint(k_true, (B, S), 0, NUM_CLASS, dtype=jnp.int32)
    y_true = y_true.at[0, 0].set(3)   # guarantee at least one non-padding token

    loss = jax.block_until_ready(custom_non_padding_token_loss(y_pred, y_true, NUM_CLASS))
    ref = _reference_loss(y_pred, y_true, NUM_CLASS)
    assert jnp.allclose(loss, ref, rtol=1e-5, atol=1e-5), (loss, ref)

    # Case 2: N not a multiple of the tile -> exercises the padding path.
    B2, S2 = 3, 5
    k_pred2, k_true2, key = jax.random.split(key, 3)
    y_pred2 = jax.random.normal(k_pred2, (B2, S2, NUM_CLASS), dtype=jnp.float32)
    y_true2 = jax.random.randint(k_true2, (B2, S2), 0, NUM_CLASS, dtype=jnp.int32)
    y_true2 = y_true2.at[0, 0].set(7)

    loss2 = jax.block_until_ready(custom_non_padding_token_loss(y_pred2, y_true2, NUM_CLASS))
    ref2 = _reference_loss(y_pred2, y_true2, NUM_CLASS)
    assert jnp.allclose(loss2, ref2, rtol=1e-5, atol=1e-5), (loss2, ref2)

    print("KERNEL_OK")
</pallas_src>

<mosaic_0001>
module attributes {stable_mosaic.version = 11 : i64} {
  func.func @_masked_ce_partial_kernel(%arg0: i32, %arg1: memref<16x32xf32, #tpu.memory_space<vmem>>, %arg2: memref<16x1xi32, #tpu.memory_space<vmem>>, %arg3: memref<1x8x128xf32, #tpu.memory_space<vmem>>) attributes {dimension_semantics = [#tpu.dimension_semantics<parallel>], iteration_bounds = array<i64: 1>, scalar_prefetch = 0 : i64, scratch_operands = 0 : i64, tpu.core_type = #tpu.core_type<tc>, window_params = [{transform_indices = @transform_0, window_bounds = array<i64: 16, 32>}, {transform_indices = @transform_1, window_bounds = array<i64: 16, 1>}, {transform_indices = @transform_2, window_bounds = array<i64: 1, 8, 128>}]} {
    %c0 = arith.constant 0 : index
    %c0_0 = arith.constant 0 : index
    %0 = vector.load %arg1[%c0, %c0_0] : memref<16x32xf32, #tpu.memory_space<vmem>>, vector<16x32xf32>
    %c0_1 = arith.constant 0 : index
    %c0_2 = arith.constant 0 : index
    %1 = vector.load %arg2[%c0_1, %c0_2] : memref<16x1xi32, #tpu.memory_space<vmem>>, vector<16x1xi32>
    %2 = tpu.iota {dimensions = array<i32: 1>} : vector<16x32xi32>
    %3 = vector.broadcast %1 : vector<16x1xi32> to vector<16x32xi32>
    %4 = arith.cmpi eq, %2, %3 : vector<16x32xi32>
    %cst = arith.constant 0.000000e+00 : f32
    %5 = vector.broadcast %cst : f32 to vector<16x32xf32>
    %6 = arith.select %4, %0, %5 : vector<16x32xi1>, vector<16x32xf32>
    %cst_3 = arith.constant dense<0.000000e+00> : vector<16xf32>
    %7 = vector.multi_reduction <add>, %6, %cst_3 [1] : vector<16x32xf32> to vector<16xf32>
    %8 = vector.shape_cast %7 : vector<16xf32> to vector<16x1xf32>
    %cst_4 = arith.constant dense<0xFF800000> : vector<16xf32>
    %9 = vector.multi_reduction <maximumf>, %0, %cst_4 [1] : vector<16x32xf32> to vector<16xf32>
    %10 = vector.shape_cast %9 : vector<16xf32> to vector<16x1xf32>
    %11 = vector.broadcast %10 : vector<16x1xf32> to vector<16x32xf32>
    %12 = arith.subf %0, %11 : vector<16x32xf32>
    %13 = math.exp %12 : vector<16x32xf32>
    %cst_5 = arith.constant dense<0.000000e+00> : vector<16xf32>
    %14 = vector.multi_reduction <add>, %13, %cst_5 [1] : vector<16x32xf32> to vector<16xf32>
    %15 = vector.shape_cast %14 : vector<16xf32> to vector<16x1xf32>
    %16 = math.log %15 : vector<16x1xf32>
    %17 = arith.addf %10, %16 : vector<16x1xf32>
    %18 = arith.subf %17, %8 : vector<16x1xf32>
    %c0_i32 = arith.constant 0 : i32
    %19 = vector.broadcast %c0_i32 : i32 to vector<16x1xi32>
    %20 = arith.cmpi sgt, %1, %19 : vector<16x1xi32>
    %21 = arith.extui %20 : vector<16x1xi1> to vector<16x1xi32>
    %22 = arith.sitofp %21 : vector<16x1xi32> to vector<16x1xf32>
    %23 = arith.mulf %18, %22 : vector<16x1xf32>
    %24 = vector.shape_cast %23 : vector<16x1xf32> to vector<1x16x1xf32>
    %cst_6 = arith.constant dense<0.000000e+00> : vector<1xf32>
    %25 = vector.multi_reduction <add>, %24, %cst_6 [1, 2] : vector<1x16x1xf32> to vector<1xf32>
    %26 = vector.shape_cast %25 : vector<1xf32> to vector<1x1x1xf32>
    %27 = vector.extract %26[0, 0, 0] : f32 from vector<1x1x1xf32>
    %28 = vector.shape_cast %22 : vector<16x1xf32> to vector<1x16x1xf32>
    %cst_7 = arith.constant dense<0.000000e+00> : vector<1xf32>
    %29 = vector.multi_reduction <add>, %28, %cst_7 [1, 2] : vector<1x16x1xf32> to vector<1xf32>
    %30 = vector.shape_cast %29 : vector<1xf32> to vector<1x1x1xf32>
    %31 = vector.extract %30[0, 0, 0] : f32 from vector<1x1x1xf32>
    %32 = tpu.iota {dimensions = array<i32: 1>} : vector<1x8x128xi32>
    %33 = tpu.iota {dimensions = array<i32: 2>} : vector<1x8x128xi32>
    %c0_i32_8 = arith.constant 0 : i32
    %34 = vector.broadcast %c0_i32_8 : i32 to vector<1x8x128xi32>
    %35 = arith.cmpi eq, %32, %34 : vector<1x8x128xi32>
    %c0_i32_9 = arith.constant 0 : i32
    %36 = vector.broadcast %c0_i32_9 : i32 to vector<1x8x128xi32>
    %37 = arith.cmpi eq, %33, %36 : vector<1x8x128xi32>
    %38 = arith.andi %35, %37 : vector<1x8x128xi1>
    %c0_i32_10 = arith.constant 0 : i32
    %39 = vector.broadcast %c0_i32_10 : i32 to vector<1x8x128xi32>
    %40 = arith.cmpi eq, %32, %39 : vector<1x8x128xi32>
    %c1_i32 = arith.constant 1 : i32
    %41 = vector.broadcast %c1_i32 : i32 to vector<1x8x128xi32>
    %42 = arith.cmpi eq, %33, %41 : vector<1x8x128xi32>
    %43 = arith.andi %40, %42 : vector<1x8x128xi1>
    %cst_11 = arith.constant 0.000000e+00 : f32
    %44 = vector.broadcast %31 : f32 to vector<1x8x128xf32>
    %45 = vector.broadcast %cst_11 : f32 to vector<1x8x128xf32>
    %46 = arith.select %43, %44, %45 : vector<1x8x128xi1>, vector<1x8x128xf32>
    %47 = vector.broadcast %27 : f32 to vector<1x8x128xf32>
    %48 = arith.select %38, %47, %46 : vector<1x8x128xi1>, vector<1x8x128xf32>
    %c0_12 = arith.constant 0 : index
    %c0_13 = arith.constant 0 : index
    %c0_14 = arith.constant 0 : index
    %49 = vector.load %arg3[%c0_12, %c0_13, %c0_14] : memref<1x8x128xf32, #tpu.memory_space<vmem>>, vector<1x8x128xf32>
    tpu.vector_store %arg3[%c0_12, %c0_13, %c0_14], %48 {strides = array<i32>} : memref<1x8x128xf32, #tpu.memory_space<vmem>>, vector<1x8x128xf32>,
    return
  }
  func.func @transform_0(%arg0: i32) -> (i32, i32) {
    %c0_i32 = arith.constant 0 : i32
    %c0_i32_0 = arith.constant 0 : i32
    return %arg0, %c0_i32 : i32, i32
  }
  func.func @transform_1(%arg0: i32) -> (i32, i32) {
    %c0_i32 = arith.constant 0 : i32
    %c0_i32_0 = arith.constant 0 : i32
    return %arg0, %c0_i32 : i32, i32
  }
  func.func @transform_2(%arg0: i32) -> (i32, i32, i32) {
    %c0_i32 = arith.constant 0 : i32
    %c0_i32_0 = arith.constant 0 : i32
    %c0_i32_1 = arith.constant 0 : i32
    return %arg0, %c0_i32, %c0_i32_0 : i32, i32, i32
  }
}

</mosaic_0001>

<bundles_post_ra>
// kernel: tpu_custom_call.1
= control target key start
LH: loop header
LB: loop body
LE: loop exit
PB: predicated region body
PF: predicated region fallthrough
CT: control target
= control target key end

     0   :  { %vm28_vm0 = vcmask 261120   ;;  %v161_v4 = vmov 0   ;;  %s212_s0 = inlined_call_operand.vmem [shape: f32[16,32], index: 0, kind: input, shape index: {}]   ;;  %s213_s1 = inlined_call_operand.vmem [shape: s32[16,1], index: 1, kind: input, shape index: {}]   ;;  %s214_s2 = inlined_call_operand.hbm [shape: f32[1,8,128], index: 2, kind: output, shape index: {}]  }
   0x1   :  { %v12_v0 = vld [vmem:[%s212_s0] sm:$0xff]  ;;  %v13_v1 = vld [vmem:[%s212_s0 + $0x8] sm:$0xff]  ;;  %129 = vset.pattern.permute.xlu1 %v161_v4  ;;  %130 = vset.pattern.permute.xlu0 %v161_v4 }
   0x2   :  { %v14_v2 = vld [vmem:[%s213_s1] sm:$0xff]  ;;  %v35_v3 = vsel %vm28_vm0, %v12_v0, -inf }
   0x3   :  { %7 = vsyncpa [#allocation3], 0  ;;  %36 = vmax.xlane.f32.xlu0 %v35_v3  ;;  %19 = vperm.xlu1 %129, %v14_v2   ;;  %v38_v5 = vsel %vm28_vm0, %v13_v1, -inf  ;;  %v15_v6 = vld [vmem:[%s213_s1 + $0x8] sm:$0xff]  ;;  %v16_v13 = vlaneseq  ;;  %vm61_vm3 = vcmp.gt.s32.totalorder %v14_v2, 0  ;;  %v162_v25 = vmov 0.0  }
   0x4   :  { %vm62_vm4 = vcmp.gt.s32.totalorder %v15_v6, 0  ;;  %v120_v26 = vsel %vm61_vm3, 1.0, %v162_v25  ;;  %vm69_vm5 = vcmask 7168   ;;  %s163_s1 = smov [#allocation2]  }
   0x5   :  { %v194_v15 = vand.u32 127, %v16_v13  ;;  %v121_v27 = vsel %vm62_vm4, 1.0, %v162_v25  ;;  %v82_v28 = vsel %vm69_vm5, %v120_v26, 0.0  ;;  %v95_v62 = vshrl.u32 %v16_v13, 7  ;;  %s112_s17 = sshll.u32 %s163_s1, 4  ;;  %s113_s17 = int_to_ptr.vmem [resolvable:$true] %s112_s17 }
   0x6   :  { %v83_v29 = vsel %vm69_vm5, %v121_v27, 0.0  ;;  %s139_s19 = scalar_lea.vmem %s113_s17, 128  ;;  %p144_p1 = scmp.lt.s32.totalorder %s113_s17, %s113_s17 }
   0x7   :  { %39 = vmax.xlane.f32.xlu0 %v38_v5  ;;  %22 = vperm.xlu1 %129, %v15_v6   ;;  %v84_v30 = vadd.f32 %v83_v29, %v82_v28  ;;  %vm96_vm6 = vcmp.eq.s32.totalorder %v95_v62, 0  ;;  %vm99_vm7 = vcmp.eq.s32.totalorder %v194_v15, 1  ;;  %vm97_vm8 = vcmp.eq.s32.totalorder %v194_v15, 0  ;;  %p140_p0 = scmp.ne.s32.totalorder %s113_s17, %s139_s19  ;;  %p145_p2 = scmp.lt.s32.totalorder %s139_s19, %s139_s19 }
   0x8   :  { %vm100_vm9 = vmand %vm96_vm6, %vm99_vm7 }
   0x9   :  { %vm98_vm10 = vmand %vm96_vm6, %vm97_vm8  ;;  %p146_p3 = por %p145_p2, %p144_p1 }
   0xb   :  { %p147_p4 = pnand %p146_p3, %p140_p0 }
  0x7e   :  { %v20_v14 = vpop.permute.xlu1 %19 }
  0x7f   :  { %vm24_vm1 = vcmp.eq.s32.totalorder %v194_v15, %v20_v14 }
  0x80   :  { %v26_v18 = vsel %vm24_vm1, %v12_v0, 0.0 }
  0x81   :  { %v29_v20 = vsel %vm28_vm0, %v26_v18, 0.0 }
  0x82   :  { %v23_v16 = vpop.permute.xlu1 %22 }
  0x83   :  { %vm25_vm2 = vcmp.eq.s32.totalorder %v194_v15, %v23_v16 }
  0x84   :  { %v27_v22 = vsel %vm25_vm2, %v13_v1, 0.0 }
  0x85   :  { %v32_v24 = vsel %vm28_vm0, %v27_v22, 0.0 }
  0x8c   :  { %v37_v7 = vpop.xlane.xlu0 %36 }
  0x8d   :  { %v41_v8 = vsub.f32 %v12_v0, %v37_v7 }
  0x8f   :  { %v43_v9 = vmul.f32 1.442695, %v41_v8 }
  0x90   :  { %v40_v10 = vpop.xlane.xlu0 %39 }
  0x91   :  { %131 = vpow2.f32 %v43_v9  ;;  %v42_v11 = vsub.f32 %v13_v1, %v40_v10 }
  0x93   :  { %v45_v12 = vmul.f32 1.442695, %v42_v11 }
  0x95   :  { %133 = vpow2.f32 %v45_v12 }
  0x9e   :  { %v132_v17 = vpop.eup %131 }
  0x9f   :  { %v47_v19 = vsel %vm28_vm0, %v132_v17, 0.0 }
  0xa0   :  { %48 = vadd.xlane.f32.xlu0 %v47_v19 }
  0xa2   :  { %v134_v21 = vpop.eup %133 }
  0xa3   :  { %v50_v23 = vsel %vm28_vm0, %v134_v21, 0.0 }
  0xa4   :  { %51 = vadd.xlane.f32.xlu1 %v50_v23  ;;  %30 = vadd.xlane.f32.xlu0 %v29_v20 }
  0xa8   :  { %33 = vadd.xlane.f32.xlu0 %v32_v24 }
 0x129   :  { %v49_v31 = vpop.xlane.xlu0 %48 }
 0x12a   :  { %135 = vlog2.f32 %v49_v31 }
 0x12d   :  { %v52_v32 = vpop.xlane.xlu1 %51  ;;  %v31_v35 = vpop.xlane.xlu0 %30 }
 0x12e   :  { %137 = vlog2.f32 %v52_v32 }
 0x131   :  { %v34_v41 = vpop.xlane.xlu0 %33 }
 0x137   :  { %v136_v33 = vpop.eup %135 }
 0x138   :  { %v54_v34 = vmul.f32 0.6931472, %v136_v33 }
 0x13a   :  { %v57_v36 = vadd.f32 %v54_v34, %v37_v7 }
 0x13b   :  { %v138_v37 = vpop.eup %137 }
 0x13c   :  { %v56_v38 = vmul.f32 0.6931472, %v138_v37  ;;  %v59_v39 = vsub.f32 %v57_v36, %v31_v35 }
 0x13e   :  { %v58_v40 = vadd.f32 %v56_v38, %v40_v10  ;;  %v67_v42 = vmul.f32 %v120_v26, %v59_v39 }
 0x140   :  { %v60_v43 = vsub.f32 %v58_v40, %v34_v41  ;;  %v70_v45 = vsel %vm69_vm5, %v67_v42, 0.0 }
 0x142   :  { %v68_v44 = vmul.f32 %v121_v27, %v60_v43 }
 0x144   :  { %v71_v46 = vsel %vm69_vm5, %v68_v44, 0.0 }
 0x145   :  { %v72_v47 = vadd.f32 %v71_v46, %v70_v45 }
 0x147   :  { %73 = vadd.xlane.f32.xlu0 %v72_v47 }
 0x14b   :  { %85 = vadd.xlane.f32.xlu0 %v84_v30 }
 0x1d0   :  { %v74_v48 = vpop.xlane.xlu0 %73 }
 0x1d1   :  { %v75_v49 = vrot.slane %v74_v48, 4 }
 0x1d3   :  { %v76_v50 = vadd.f32 %v75_v49, %v74_v48 }
 0x1d4   :  { %v86_v51 = vpop.xlane.xlu0 %85 }
 0x1d5   :  { %v77_v52 = vrot.slane %v76_v50, 2  ;;  %v87_v53 = vrot.slane %v86_v51, 4 }
 0x1d7   :  { %v88_v54 = vadd.f32 %v87_v53, %v86_v51  ;;  %v78_v55 = vadd.f32 %v77_v52, %v76_v50 }
 0x1d9   :  { %v89_v56 = vrot.slane %v88_v54, 2  ;;  %v79_v57 = vrot.slane %v78_v55, 1 }
 0x1db   :  { %v90_v58 = vadd.f32 %v89_v56, %v88_v54  ;;  %v80_v59 = vadd.f32 %v79_v57, %v78_v55 }
 0x1dd   :  { %122 = vpush %v80_v59  ;;  %v91_v60 = vrot.slane %v90_v58, 1 }
 0x1df   :  { %v92_v61 = vadd.f32 %v91_v60, %v90_v58 }
 0x1e1   :  { %124 = vpush %v92_v61 }
 0x20e   :  { %s123_s0 = spop %122 }
 0x20f   :  { %v103_v0 = vstv %s123_s0 }
 0x212   :  { %s125_s18 = spop %124 }
 0x213   :  { %v101_v63 = vstv %s125_s18 }
 0x214   :  { %v102_v1 = vsel %vm100_vm9, %v101_v63, 0.0 }
 0x215   :  { %v104_v2 = vsel %vm98_vm10, %v103_v0, %v102_v1 }
 0x216   :  { %105 = vst [vmem:[#allocation2] sm:$0xff] %v104_v2 }
 0x217   :  { %150 = shalt.err (!%p147_p4)
}
 0x218   :  { %115 = dma.vmem_to_hbm [thread:$0]  %s113_s17, 128, %s214_s2, [#allocation3]  }
 0x219   :  { %159 = dma.done.wait [#allocation3], 128  }
 0x21a   :  { %160 = vsyncadd [#allocation3], 4294967168 }
 0x21b   :  { %119 = vsyncpa [#allocation3], 1 }

</bundles_post_ra>
